<compile_context>
chip_gen: v7x
topology: tpu7x:2x2x1
jax: 0.10.0
libtpu: 0.0.40
codegen_flags: <defaults>
</compile_context>

<pallas_src>
import jax
import jax.numpy as jnp
from jax.experimental import pallas as pl
from jax.experimental.pallas import tpu as pltpu


def _task_embedding_gather_kernel(ids_ref, fused_hbm, out_ref, rows_vmem, copy_sems):
    # ids_ref   : SMEM (B,)   int32   task ids
    # fused_hbm : HBM  (T, H)         pre-fused (table @ W + b) table, not auto-DMA'd
    # out_ref   : VMEM (B, H)         output
    # rows_vmem : VMEM (B, H)         gathered rows (same dtype as fused table)
    # copy_sems : DMA semaphores (B,)
    B = out_ref.shape[0]

    # Issue all B row DMAs (HBM -> VMEM), then wait: the copies overlap.
    # B is small & static here, so a Python loop is fine.
    # TODO(synk): for large B switch to lax.fori_loop / a grid axis over row
    # tiles with dimension_semantics=("parallel",) so v7x's 2 TCs share the work.
    copies = []
    for b in range(B):
        tid = ids_ref[b]                                   # scalar read from SMEM
        cp = pltpu.make_async_copy(
            fused_hbm.at[pl.ds(tid, 1), :],                # one [1, H] row at dynamic offset
            rows_vmem.at[pl.ds(b, 1), :],
            copy_sems.at[b],
        )
        cp.start()
        copies.append(cp)
    for cp in copies:
        cp.wait()

    # One coalesced, lane-dense store (H is a multiple of 128): a single
    # unmasked vst instead of B masked partial stores; also upcasts if the
    # fused table is kept in bf16.
    out_ref[...] = rows_vmem[...].astype(out_ref.dtype)


def fuse_task_embedding_params(table, w_proj, b_proj, table_dtype=jnp.float32):
    """Fold the Linear into the embedding table: fused[t] = table[t] @ W + b.

    Call ONCE at parameter-load time (and re-call whenever table/W/b change);
    the per-call forward is then a pure row gather.  table_dtype=jnp.bfloat16
    halves per-row HBM->VMEM DMA bytes (the kernel casts to f32 on store) at a
    small precision cost.
    """
    H = w_proj.shape[1]
    fused = jnp.dot(
        table.astype(jnp.float32),
        w_proj.astype(jnp.float32),
        preferred_element_type=jnp.float32,
    ) + jnp.reshape(b_proj, (1, H)).astype(jnp.float32)
    return fused.astype(table_dtype)            # flat [T, H] — no sublane padding


def task_embedding(task_ids, fused_table, out_dtype=jnp.float32):
    """task_ids: [B] int; fused_table: [T, H] from fuse_task_embedding_params -> [B, H]."""
    B = task_ids.shape[0]
    T, H = fused_table.shape

    # TODO(synk): PyTorch nn.Embedding raises on out-of-range ids; we clamp so
    # the dynamic-row DMA stays in bounds instead of raising.
    ids = jnp.clip(task_ids.astype(jnp.int32), 0, T - 1)

    row_bytes = H * jnp.dtype(fused_table.dtype).itemsize
    bytes_accessed = B * 4 + B * row_bytes + B * H * jnp.dtype(out_dtype).itemsize

    return pl.pallas_call(
        _task_embedding_gather_kernel,
        out_shape=jax.ShapeDtypeStruct((B, H), out_dtype),
        in_specs=[
            pl.BlockSpec(memory_space=pltpu.MemorySpace.SMEM),  # task ids (scalar control)
            pl.BlockSpec(memory_space=pl.ANY),                  # fused table stays in HBM
        ],
        out_specs=pl.BlockSpec(memory_space=pltpu.MemorySpace.VMEM),
        scratch_shapes=[
            pltpu.VMEM((B, H), fused_table.dtype),              # gathered rows
            pltpu.SemaphoreType.DMA((B,)),                      # one sem per row DMA
        ],
        compiler_params=pltpu.CompilerParams(
            # Actual VMEM residency is O(B*H); 16 MiB is an explicit, safe
            # budget on every generation (under v5e's 16 MiB default scoped
            # limit and far under v7x's 64 MiB physical VMEM).
            vmem_limit_bytes=16 * 1024 * 1024,
        ),
        cost_estimate=pl.CostEstimate(
            flops=0, transcendentals=0, bytes_accessed=int(bytes_accessed)
        ),
    )(ids, fused_table)


if __name__ == "__main__":
    # Module config (small, consistent with the forward pass; H lane-dense)
    num_tasks = 8
    embedding_dim = 32
    hidden_size = 128
    batch_size = 8

    key = jax.random.PRNGKey(0)
    k_tab, k_w, k_b, k_ids = jax.random.split(key, 4)

    # nn.Embedding weight, init normal(std=0.02)
    table = 0.02 * jax.random.normal(k_tab, (num_tasks, embedding_dim), jnp.float32)
    # nn.Linear(embedding_dim, hidden_size): weight [H, E], bias [H]
    bound = 1.0 / (embedding_dim ** 0.5)
    w_linear = jax.random.uniform(
        k_w, (hidden_size, embedding_dim), jnp.float32, minval=-bound, maxval=bound
    )
    b_linear = jax.random.uniform(
        k_b, (hidden_size,), jnp.float32, minval=-bound, maxval=bound
    )

    w_proj = w_linear.T                        # [E, H]
    b_proj = b_linear                          # [H]

    task_ids = jax.random.randint(k_ids, (batch_size,), 0, num_tasks, jnp.int32)

    # Parameter-load-time fusion (done ONCE, outside the forward path).
    fused_table = fuse_task_embedding_params(table, w_proj, b_proj, jnp.float32)
    fused_table = jax.block_until_ready(fused_table)

    out = task_embedding(task_ids, fused_table)
    out = jax.block_until_ready(out)

    # reference check (plain JAX, mirrors the PyTorch forward)
    ref = table[task_ids] @ w_proj + b_proj.reshape(1, hidden_size)
    assert out.shape == (batch_size, hidden_size)
    assert jnp.allclose(out, ref, atol=1e-5, rtol=1e-5)

    print("KERNEL_OK")
</pallas_src>

<mosaic_0001>
module attributes {stable_mosaic.version = 11 : i64} {
  func.func @_task_embedding_gather_kernel(%arg0: memref<8xi32, #tpu.memory_space<smem>>, %arg1: memref<8x128xf32, #tpu.memory_space<any>>, %arg2: memref<8x128xf32, #tpu.memory_space<vmem>>, %arg3: memref<8x128xf32, #tpu.memory_space<vmem>>, %arg4: memref<8x!tpu.dma_semaphore, #tpu.memory_space<semaphore_mem>>) attributes {dimension_semantics = [], scalar_prefetch = 0 : i64, scratch_operands = 2 : i64, tpu.core_type = #tpu.core_type<tc>} {
    %c0 = arith.constant 0 : index
    %0 = memref.load %arg0[%c0] : memref<8xi32, #tpu.memory_space<smem>>
    %c0_i32 = arith.constant 0 : i32
    %c0_i32_0 = arith.constant 0 : i32
    %1 = tpu.memref_slice %arg1[%0, %c0_i32_0] : memref<8x128xf32, #tpu.memory_space<any>> -> memref<1x128xf32, #tpu.memory_space<any>>
    %c0_i32_1 = arith.constant 0 : i32
    %c0_i32_2 = arith.constant 0 : i32
    %2 = tpu.memref_slice %arg3[%c0_i32_1, %c0_i32_2] : memref<8x128xf32, #tpu.memory_space<vmem>> -> memref<1x128xf32, #tpu.memory_space<vmem>>
    %3 = tpu.memref_slice %arg4[%c0_i32] : memref<8x!tpu.dma_semaphore, #tpu.memory_space<semaphore_mem>> -> memref<1x!tpu.dma_semaphore, #tpu.memory_space<semaphore_mem>>
    %4 = tpu.memref_squeeze %3 : memref<1x!tpu.dma_semaphore, #tpu.memory_space<semaphore_mem>> -> memref<!tpu.dma_semaphore, #tpu.memory_space<semaphore_mem>>
    tpu.enqueue_dma source(%1 : memref<1x128xf32, #tpu.memory_space<any>>) target(%2 : memref<1x128xf32, #tpu.memory_space<vmem>>) target_semaphore(%4 : memref<!tpu.dma_semaphore, #tpu.memory_space<semaphore_mem>>)
    %c1 = arith.constant 1 : index
    %5 = memref.load %arg0[%c1] : memref<8xi32, #tpu.memory_space<smem>>
    %c1_i32 = arith.constant 1 : i32
    %c0_i32_3 = arith.constant 0 : i32
    %6 = tpu.memref_slice %arg1[%5, %c0_i32_3] : memref<8x128xf32, #tpu.memory_space<any>> -> memref<1x128xf32, #tpu.memory_space<any>>
    %c1_i32_4 = arith.constant 1 : i32
    %c0_i32_5 = arith.constant 0 : i32
    %7 = tpu.memref_slice %arg3[%c1_i32_4, %c0_i32_5] : memref<8x128xf32, #tpu.memory_space<vmem>> -> memref<1x128xf32, #tpu.memory_space<vmem>>
    %8 = tpu.memref_slice %arg4[%c1_i32] : memref<8x!tpu.dma_semaphore, #tpu.memory_space<semaphore_mem>> -> memref<1x!tpu.dma_semaphore, #tpu.memory_space<semaphore_mem>>
    %9 = tpu.memref_squeeze %8 : memref<1x!tpu.dma_semaphore, #tpu.memory_space<semaphore_mem>> -> memref<!tpu.dma_semaphore, #tpu.memory_space<semaphore_mem>>
    tpu.enqueue_dma source(%6 : memref<1x128xf32, #tpu.memory_space<any>>) target(%7 : memref<1x128xf32, #tpu.memory_space<vmem>>) target_semaphore(%9 : memref<!tpu.dma_semaphore, #tpu.memory_space<semaphore_mem>>)
    %c2 = arith.constant 2 : index
    %10 = memref.load %arg0[%c2] : memref<8xi32, #tpu.memory_space<smem>>
    %c2_i32 = arith.constant 2 : i32
    %c0_i32_6 = arith.constant 0 : i32
    %11 = tpu.memref_slice %arg1[%10, %c0_i32_6] : memref<8x128xf32, #tpu.memory_space<any>> -> memref<1x128xf32, #tpu.memory_space<any>>
    %c2_i32_7 = arith.constant 2 : i32
    %c0_i32_8 = arith.constant 0 : i32
    %12 = tpu.memref_slice %arg3[%c2_i32_7, %c0_i32_8] : memref<8x128xf32, #tpu.memory_space<vmem>> -> memref<1x128xf32, #tpu.memory_space<vmem>>
    %13 = tpu.memref_slice %arg4[%c2_i32] : memref<8x!tpu.dma_semaphore, #tpu.memory_space<semaphore_mem>> -> memref<1x!tpu.dma_semaphore, #tpu.memory_space<semaphore_mem>>
    %14 = tpu.memref_squeeze %13 : memref<1x!tpu.dma_semaphore, #tpu.memory_space<semaphore_mem>> -> memref<!tpu.dma_semaphore, #tpu.memory_space<semaphore_mem>>
    tpu.enqueue_dma source(%11 : memref<1x128xf32, #tpu.memory_space<any>>) target(%12 : memref<1x128xf32, #tpu.memory_space<vmem>>) target_semaphore(%14 : memref<!tpu.dma_semaphore, #tpu.memory_space<semaphore_mem>>)
    %c3 = arith.constant 3 : index
    %15 = memref.load %arg0[%c3] : memref<8xi32, #tpu.memory_space<smem>>
    %c3_i32 = arith.constant 3 : i32
    %c0_i32_9 = arith.constant 0 : i32
    %16 = tpu.memref_slice %arg1[%15, %c0_i32_9] : memref<8x128xf32, #tpu.memory_space<any>> -> memref<1x128xf32, #tpu.memory_space<any>>
    %c3_i32_10 = arith.constant 3 : i32
    %c0_i32_11 = arith.constant 0 : i32
    %17 = tpu.memref_slice %arg3[%c3_i32_10, %c0_i32_11] : memref<8x128xf32, #tpu.memory_space<vmem>> -> memref<1x128xf32, #tpu.memory_space<vmem>>
    %18 = tpu.memref_slice %arg4[%c3_i32] : memref<8x!tpu.dma_semaphore, #tpu.memory_space<semaphore_mem>> -> memref<1x!tpu.dma_semaphore, #tpu.memory_space<semaphore_mem>>
    %19 = tpu.memref_squeeze %18 : memref<1x!tpu.dma_semaphore, #tpu.memory_space<semaphore_mem>> -> memref<!tpu.dma_semaphore, #tpu.memory_space<semaphore_mem>>
    tpu.enqueue_dma source(%16 : memref<1x128xf32, #tpu.memory_space<any>>) target(%17 : memref<1x128xf32, #tpu.memory_space<vmem>>) target_semaphore(%19 : memref<!tpu.dma_semaphore, #tpu.memory_space<semaphore_mem>>)
    %c4 = arith.constant 4 : index
    %20 = memref.load %arg0[%c4] : memref<8xi32, #tpu.memory_space<smem>>
    %c4_i32 = arith.constant 4 : i32
    %c0_i32_12 = arith.constant 0 : i32
    %21 = tpu.memref_slice %arg1[%20, %c0_i32_12] : memref<8x128xf32, #tpu.memory_space<any>> -> memref<1x128xf32, #tpu.memory_space<any>>
    %c4_i32_13 = arith.constant 4 : i32
    %c0_i32_14 = arith.constant 0 : i32
    %22 = tpu.memref_slice %arg3[%c4_i32_13, %c0_i32_14] : memref<8x128xf32, #tpu.memory_space<vmem>> -> memref<1x128xf32, #tpu.memory_space<vmem>>
    %23 = tpu.memref_slice %arg4[%c4_i32] : memref<8x!tpu.dma_semaphore, #tpu.memory_space<semaphore_mem>> -> memref<1x!tpu.dma_semaphore, #tpu.memory_space<semaphore_mem>>
    %24 = tpu.memref_squeeze %23 : memref<1x!tpu.dma_semaphore, #tpu.memory_space<semaphore_mem>> -> memref<!tpu.dma_semaphore, #tpu.memory_space<semaphore_mem>>
    tpu.enqueue_dma source(%21 : memref<1x128xf32, #tpu.memory_space<any>>) target(%22 : memref<1x128xf32, #tpu.memory_space<vmem>>) target_semaphore(%24 : memref<!tpu.dma_semaphore, #tpu.memory_space<semaphore_mem>>)
    %c5 = arith.constant 5 : index
    %25 = memref.load %arg0[%c5] : memref<8xi32, #tpu.memory_space<smem>>
    %c5_i32 = arith.constant 5 : i32
    %c0_i32_15 = arith.constant 0 : i32
    %26 = tpu.memref_slice %arg1[%25, %c0_i32_15] : memref<8x128xf32, #tpu.memory_space<any>> -> memref<1x128xf32, #tpu.memory_space<any>>
    %c5_i32_16 = arith.constant 5 : i32
    %c0_i32_17 = arith.constant 0 : i32
    %27 = tpu.memref_slice %arg3[%c5_i32_16, %c0_i32_17] : memref<8x128xf32, #tpu.memory_space<vmem>> -> memref<1x128xf32, #tpu.memory_space<vmem>>
    %28 = tpu.memref_slice %arg4[%c5_i32] : memref<8x!tpu.dma_semaphore, #tpu.memory_space<semaphore_mem>> -> memref<1x!tpu.dma_semaphore, #tpu.memory_space<semaphore_mem>>
    %29 = tpu.memref_squeeze %28 : memref<1x!tpu.dma_semaphore, #tpu.memory_space<semaphore_mem>> -> memref<!tpu.dma_semaphore, #tpu.memory_space<semaphore_mem>>
    tpu.enqueue_dma source(%26 : memref<1x128xf32, #tpu.memory_space<any>>) target(%27 : memref<1x128xf32, #tpu.memory_space<vmem>>) target_semaphore(%29 : memref<!tpu.dma_semaphore, #tpu.memory_space<semaphore_mem>>)
    %c6 = arith.constant 6 : index
    %30 = memref.load %arg0[%c6] : memref<8xi32, #tpu.memory_space<smem>>
    %c6_i32 = arith.constant 6 : i32
    %c0_i32_18 = arith.constant 0 : i32
    %31 = tpu.memref_slice %arg1[%30, %c0_i32_18] : memref<8x128xf32, #tpu.memory_space<any>> -> memref<1x128xf32, #tpu.memory_space<any>>
    %c6_i32_19 = arith.constant 6 : i32
    %c0_i32_20 = arith.constant 0 : i32
    %32 = tpu.memref_slice %arg3[%c6_i32_19, %c0_i32_20] : memref<8x128xf32, #tpu.memory_space<vmem>> -> memref<1x128xf32, #tpu.memory_space<vmem>>
    %33 = tpu.memref_slice %arg4[%c6_i32] : memref<8x!tpu.dma_semaphore, #tpu.memory_space<semaphore_mem>> -> memref<1x!tpu.dma_semaphore, #tpu.memory_space<semaphore_mem>>
    %34 = tpu.memref_squeeze %33 : memref<1x!tpu.dma_semaphore, #tpu.memory_space<semaphore_mem>> -> memref<!tpu.dma_semaphore, #tpu.memory_space<semaphore_mem>>
    tpu.enqueue_dma source(%31 : memref<1x128xf32, #tpu.memory_space<any>>) target(%32 : memref<1x128xf32, #tpu.memory_space<vmem>>) target_semaphore(%34 : memref<!tpu.dma_semaphore, #tpu.memory_space<semaphore_mem>>)
    %c7 = arith.constant 7 : index
    %35 = memref.load %arg0[%c7] : memref<8xi32, #tpu.memory_space<smem>>
    %c7_i32 = arith.constant 7 : i32
    %c0_i32_21 = arith.constant 0 : i32
    %36 = tpu.memref_slice %arg1[%35, %c0_i32_21] : memref<8x128xf32, #tpu.memory_space<any>> -> memref<1x128xf32, #tpu.memory_space<any>>
    %c7_i32_22 = arith.constant 7 : i32
    %c0_i32_23 = arith.constant 0 : i32
    %37 = tpu.memref_slice %arg3[%c7_i32_22, %c0_i32_23] : memref<8x128xf32, #tpu.memory_space<vmem>> -> memref<1x128xf32, #tpu.memory_space<vmem>>
    %38 = tpu.memref_slice %arg4[%c7_i32] : memref<8x!tpu.dma_semaphore, #tpu.memory_space<semaphore_mem>> -> memref<1x!tpu.dma_semaphore, #tpu.memory_space<semaphore_mem>>
    %39 = tpu.memref_squeeze %38 : memref<1x!tpu.dma_semaphore, #tpu.memory_space<semaphore_mem>> -> memref<!tpu.dma_semaphore, #tpu.memory_space<semaphore_mem>>
    tpu.enqueue_dma source(%36 : memref<1x128xf32, #tpu.memory_space<any>>) target(%37 : memref<1x128xf32, #tpu.memory_space<vmem>>) target_semaphore(%39 : memref<!tpu.dma_semaphore, #tpu.memory_space<semaphore_mem>>)
    %c0_i32_24 = arith.constant 0 : i32
    %c0_i32_25 = arith.constant 0 : i32
    %40 = tpu.memref_slice %arg1[%0, %c0_i32_25] : memref<8x128xf32, #tpu.memory_space<any>> -> memref<1x128xf32, #tpu.memory_space<any>>
    %c0_i32_26 = arith.constant 0 : i32
    %c0_i32_27 = arith.constant 0 : i32
    %41 = tpu.memref_slice %arg3[%c0_i32_26, %c0_i32_27] : memref<8x128xf32, #tpu.memory_space<vmem>> -> memref<1x128xf32, #tpu.memory_space<vmem>>
    %42 = tpu.memref_slice %arg4[%c0_i32_24] : memref<8x!tpu.dma_semaphore, #tpu.memory_space<semaphore_mem>> -> memref<1x!tpu.dma_semaphore, #tpu.memory_space<semaphore_mem>>
    %43 = tpu.memref_squeeze %42 : memref<1x!tpu.dma_semaphore, #tpu.memory_space<semaphore_mem>> -> memref<!tpu.dma_semaphore, #tpu.memory_space<semaphore_mem>>
    tpu.wait_dma2 semaphore(%43 : memref<!tpu.dma_semaphore, #tpu.memory_space<semaphore_mem>>) src(%40 : memref<1x128xf32, #tpu.memory_space<any>>) dst(%41 : memref<1x128xf32, #tpu.memory_space<vmem>>)
    %c1_i32_28 = arith.constant 1 : i32
    %c0_i32_29 = arith.constant 0 : i32
    %44 = tpu.memref_slice %arg1[%5, %c0_i32_29] : memref<8x128xf32, #tpu.memory_space<any>> -> memref<1x128xf32, #tpu.memory_space<any>>
    %c1_i32_30 = arith.constant 1 : i32
    %c0_i32_31 = arith.constant 0 : i32
    %45 = tpu.memref_slice %arg3[%c1_i32_30, %c0_i32_31] : memref<8x128xf32, #tpu.memory_space<vmem>> -> memref<1x128xf32, #tpu.memory_space<vmem>>
    %46 = tpu.memref_slice %arg4[%c1_i32_28] : memref<8x!tpu.dma_semaphore, #tpu.memory_space<semaphore_mem>> -> memref<1x!tpu.dma_semaphore, #tpu.memory_space<semaphore_mem>>
    %47 = tpu.memref_squeeze %46 : memref<1x!tpu.dma_semaphore, #tpu.memory_space<semaphore_mem>> -> memref<!tpu.dma_semaphore, #tpu.memory_space<semaphore_mem>>
    tpu.wait_dma2 semaphore(%47 : memref<!tpu.dma_semaphore, #tpu.memory_space<semaphore_mem>>) src(%44 : memref<1x128xf32, #tpu.memory_space<any>>) dst(%45 : memref<1x128xf32, #tpu.memory_space<vmem>>)
    %c2_i32_32 = arith.constant 2 : i32
    %c0_i32_33 = arith.constant 0 : i32
    %48 = tpu.memref_slice %arg1[%10, %c0_i32_33] : memref<8x128xf32, #tpu.memory_space<any>> -> memref<1x128xf32, #tpu.memory_space<any>>
    %c2_i32_34 = arith.constant 2 : i32
    %c0_i32_35 = arith.constant 0 : i32
    %49 = tpu.memref_slice %arg3[%c2_i32_34, %c0_i32_35] : memref<8x128xf32, #tpu.memory_space<vmem>> -> memref<1x128xf32, #tpu.memory_space<vmem>>
    %50 = tpu.memref_slice %arg4[%c2_i32_32] : memref<8x!tpu.dma_semaphore, #tpu.memory_space<semaphore_mem>> -> memref<1x!tpu.dma_semaphore, #tpu.memory_space<semaphore_mem>>
    %51 = tpu.memref_squeeze %50 : memref<1x!tpu.dma_semaphore, #tpu.memory_space<semaphore_mem>> -> memref<!tpu.dma_semaphore, #tpu.memory_space<semaphore_mem>>
    tpu.wait_dma2 semaphore(%51 : memref<!tpu.dma_semaphore, #tpu.memory_space<semaphore_mem>>) src(%48 : memref<1x128xf32, #tpu.memory_space<any>>) dst(%49 : memref<1x128xf32, #tpu.memory_space<vmem>>)
    %c3_i32_36 = arith.constant 3 : i32
    %c0_i32_37 = arith.constant 0 : i32
    %52 = tpu.memref_slice %arg1[%15, %c0_i32_37] : memref<8x128xf32, #tpu.memory_space<any>> -> memref<1x128xf32, #tpu.memory_space<any>>
    %c3_i32_38 = arith.constant 3 : i32
    %c0_i32_39 = arith.constant 0 : i32
    %53 = tpu.memref_slice %arg3[%c3_i32_38, %c0_i32_39] : memref<8x128xf32, #tpu.memory_space<vmem>> -> memref<1x128xf32, #tpu.memory_space<vmem>>
    %54 = tpu.memref_slice %arg4[%c3_i32_36] : memref<8x!tpu.dma_semaphore, #tpu.memory_space<semaphore_mem>> -> memref<1x!tpu.dma_semaphore, #tpu.memory_space<semaphore_mem>>
    %55 = tpu.memref_squeeze %54 : memref<1x!tpu.dma_semaphore, #tpu.memory_space<semaphore_mem>> -> memref<!tpu.dma_semaphore, #tpu.memory_space<semaphore_mem>>
    tpu.wait_dma2 semaphore(%55 : memref<!tpu.dma_semaphore, #tpu.memory_space<semaphore_mem>>) src(%52 : memref<1x128xf32, #tpu.memory_space<any>>) dst(%53 : memref<1x128xf32, #tpu.memory_space<vmem>>)
    %c4_i32_40 = arith.constant 4 : i32
    %c0_i32_41 = arith.constant 0 : i32
    %56 = tpu.memref_slice %arg1[%20, %c0_i32_41] : memref<8x128xf32, #tpu.memory_space<any>> -> memref<1x128xf32, #tpu.memory_space<any>>
    %c4_i32_42 = arith.constant 4 : i32
    %c0_i32_43 = arith.constant 0 : i32
    %57 = tpu.memref_slice %arg3[%c4_i32_42, %c0_i32_43] : memref<8x128xf32, #tpu.memory_space<vmem>> -> memref<1x128xf32, #tpu.memory_space<vmem>>
    %58 = tpu.memref_slice %arg4[%c4_i32_40] : memref<8x!tpu.dma_semaphore, #tpu.memory_space<semaphore_mem>> -> memref<1x!tpu.dma_semaphore, #tpu.memory_space<semaphore_mem>>
    %59 = tpu.memref_squeeze %58 : memref<1x!tpu.dma_semaphore, #tpu.memory_space<semaphore_mem>> -> memref<!tpu.dma_semaphore, #tpu.memory_space<semaphore_mem>>
    tpu.wait_dma2 semaphore(%59 : memref<!tpu.dma_semaphore, #tpu.memory_space<semaphore_mem>>) src(%56 : memref<1x128xf32, #tpu.memory_space<any>>) dst(%57 : memref<1x128xf32, #tpu.memory_space<vmem>>)
    %c5_i32_44 = arith.constant 5 : i32
    %c0_i32_45 = arith.constant 0 : i32
    %60 = tpu.memref_slice %arg1[%25, %c0_i32_45] : memref<8x128xf32, #tpu.memory_space<any>> -> memref<1x128xf32, #tpu.memory_space<any>>
    %c5_i32_46 = arith.constant 5 : i32
    %c0_i32_47 = arith.constant 0 : i32
    %61 = tpu.memref_slice %arg3[%c5_i32_46, %c0_i32_47] : memref<8x128xf32, #tpu.memory_space<vmem>> -> memref<1x128xf32, #tpu.memory_space<vmem>>
    %62 = tpu.memref_slice %arg4[%c5_i32_44] : memref<8x!tpu.dma_semaphore, #tpu.memory_space<semaphore_mem>> -> memref<1x!tpu.dma_semaphore, #tpu.memory_space<semaphore_mem>>
    %63 = tpu.memref_squeeze %62 : memref<1x!tpu.dma_semaphore, #tpu.memory_space<semaphore_mem>> -> memref<!tpu.dma_semaphore, #tpu.memory_space<semaphore_mem>>
    tpu.wait_dma2 semaphore(%63 : memref<!tpu.dma_semaphore, #tpu.memory_space<semaphore_mem>>) src(%60 : memref<1x128xf32, #tpu.memory_space<any>>) dst(%61 : memref<1x128xf32, #tpu.memory_space<vmem>>)
    %c6_i32_48 = arith.constant 6 : i32
    %c0_i32_49 = arith.constant 0 : i32
    %64 = tpu.memref_slice %arg1[%30, %c0_i32_49] : memref<8x128xf32, #tpu.memory_space<any>> -> memref<1x128xf32, #tpu.memory_space<any>>
    %c6_i32_50 = arith.constant 6 : i32
    %c0_i32_51 = arith.constant 0 : i32
    %65 = tpu.memref_slice %arg3[%c6_i32_50, %c0_i32_51] : memref<8x128xf32, #tpu.memory_space<vmem>> -> memref<1x128xf32, #tpu.memory_space<vmem>>
    %66 = tpu.memref_slice %arg4[%c6_i32_48] : memref<8x!tpu.dma_semaphore, #tpu.memory_space<semaphore_mem>> -> memref<1x!tpu.dma_semaphore, #tpu.memory_space<semaphore_mem>>
    %67 = tpu.memref_squeeze %66 : memref<1x!tpu.dma_semaphore, #tpu.memory_space<semaphore_mem>> -> memref<!tpu.dma_semaphore, #tpu.memory_space<semaphore_mem>>
    tpu.wait_dma2 semaphore(%67 : memref<!tpu.dma_semaphore, #tpu.memory_space<semaphore_mem>>) src(%64 : memref<1x128xf32, #tpu.memory_space<any>>) dst(%65 : memref<1x128xf32, #tpu.memory_space<vmem>>)
    %c7_i32_52 = arith.constant 7 : i32
    %c0_i32_53 = arith.constant 0 : i32
    %68 = tpu.memref_slice %arg1[%35, %c0_i32_53] : memref<8x128xf32, #tpu.memory_space<any>> -> memref<1x128xf32, #tpu.memory_space<any>>
    %c7_i32_54 = arith.constant 7 : i32
    %c0_i32_55 = arith.constant 0 : i32
    %69 = tpu.memref_slice %arg3[%c7_i32_54, %c0_i32_55] : memref<8x128xf32, #tpu.memory_space<vmem>> -> memref<1x128xf32, #tpu.memory_space<vmem>>
    %70 = tpu.memref_slice %arg4[%c7_i32_52] : memref<8x!tpu.dma_semaphore, #tpu.memory_space<semaphore_mem>> -> memref<1x!tpu.dma_semaphore, #tpu.memory_space<semaphore_mem>>
    %71 = tpu.memref_squeeze %70 : memref<1x!tpu.dma_semaphore, #tpu.memory_space<semaphore_mem>> -> memref<!tpu.dma_semaphore, #tpu.memory_space<semaphore_mem>>
    tpu.wait_dma2 semaphore(%71 : memref<!tpu.dma_semaphore, #tpu.memory_space<semaphore_mem>>) src(%68 : memref<1x128xf32, #tpu.memory_space<any>>) dst(%69 : memref<1x128xf32, #tpu.memory_space<vmem>>)
    %c0_56 = arith.constant 0 : index
    %c0_57 = arith.constant 0 : index
    %72 = vector.load %arg3[%c0_56, %c0_57] : memref<8x128xf32, #tpu.memory_space<vmem>>, vector<8x128xf32>
    %c0_58 = arith.constant 0 : index
    %c0_59 = arith.constant 0 : index
    %73 = vector.load %arg2[%c0_58, %c0_59] : memref<8x128xf32, #tpu.memory_space<vmem>>, vector<8x128xf32>
    tpu.vector_store %arg2[%c0_58, %c0_59], %72 {strides = array<i32>} : memref<8x128xf32, #tpu.memory_space<vmem>>, vector<8x128xf32>,
    return
  }
}

</mosaic_0001>

<bundles_post_ra>
// kernel: tpu_custom_call.1
= control target key start
LH: loop header
LB: loop body
LE: loop exit
PB: predicated region body
PF: predicated region fallthrough
CT: control target
= control target key end

     0   :  { %7 = vsyncpa [#allocation6], 0  ;;  %s706_s0 = inlined_call_operand.hbm [shape: s32[8], index: 0, kind: input, shape index: {}]   ;;  %s707_s1 = inlined_call_operand.hbm [shape: f32[8,128], index: 1, kind: input, shape index: {}]   ;;  %s708_s2 = inlined_call_operand.hbm [shape: f32[8,128], index: 2, kind: output, shape index: {}]  }
   0x1   :  { %8 = vsyncpa [#allocation5], 0  ;;  %s285_s11 = scalar_lea.hbm %s706_s0, 16 }
   0x2   :  { %p286_p0 = scmp.ne.s32.totalorder %s706_s0, %s285_s11  ;;  %p289_p1 = scmp.lt.u32.totalorder %s285_s11, %s706_s0 }
   0x4   :  { %p291_p2 = pnand %p289_p1, %p286_p0 }
   0x6   :  { %294 = shalt.err (!%p291_p2)
}
   0x7   :  { %s529_s16 = smov [#allocation4]  }
   0x8   :  { %16 = dma.hbm_to_smem %s706_s0, 16, %s529_s16, [#allocation6]  }
   0x9   :  { %509 = dma.done.wait [#allocation6], 16  }
   0xa   :  { %510 = vsyncadd [#allocation6], 4294967280 }
   0xb   :  { %20 = sfence }
   0xc   :  { %s21_s19 = sld [smem:[#allocation4]]  ;;  %s530_s20 = smov [#allocation2]  }
   0xd   :  { %s31_s21 = sshll.u32 %s530_s20, 4  ;;  %s566_s22 = sld [smem:[#allocation4 + $0x1]]  ;;  %s568_s21 = int_to_ptr.vmem [resolvable:$true] %s31_s21 }
   0xe   :  { %s531_s23 = smov [#allocation2 + $0x1]   ;;  %s570_s25 = sld [smem:[#allocation4 + $0x2]] }
   0xf   :  { %s47_s24 = sshll.u32 %s531_s23, 4  ;;  %s532_s26 = smov [#allocation2 + $0x2]   ;;  %s572_s24 = int_to_ptr.vmem [resolvable:$true] %s47_s24 }
  0x10   :  { %s63_s27 = sshll.u32 %s532_s26, 4  ;;  %s574_s0 = sld [smem:[#allocation4 + $0x3]]  ;;  %s576_s27 = int_to_ptr.vmem [resolvable:$true] %s63_s27 }
  0x11   :  { %s585_s8 = scalar_lea.hbm %s707_s1, 128 }
  0x12   :  { %s252_s28 = sshll.u32 %s21_s19, 4 }
  0x13   :  { %s23_s3 = scalar_lea.hbm %s707_s1, %s252_s28  ;;  %s254_s4 = sshll.u32 %s566_s22, 4 }
  0x14   :  { %s295_s5 = scalar_lea.hbm %s23_s3, 16  ;;  %p298_p4 = scmp.lt.u32.totalorder %s23_s3, %s707_s1 }
  0x15   :  { %p296_p3 = scmp.ne.s32.totalorder %s23_s3, %s295_s5  ;;  %p299_p5 = scmp.lt.u32.totalorder %s585_s8, %s295_s5 }
  0x16   :  { %p301_p7 = scmp.lt.u32.totalorder %s295_s5, %s23_s3 }
  0x17   :  { %p300_p6 = por %p299_p5, %p298_p4 }
  0x19   :  { %p302_p8 = por %p301_p7, %p300_p6 }
  0x1b   :  { %p303_p9 = pnand %p302_p8, %p296_p3 }
  0x1d   :  { %306 = shalt.err (!%p303_p9)  }
  0x1e   :  { %s307_s11 = scalar_lea.vmem %s568_s21, 16  ;;  %s594_s12 = scalar_lea.vmem %s568_s21, 128 }
  0x1f   :  { %p308_p10 = scmp.ne.s32.totalorder %s568_s21, %s307_s11  ;;  %p312_p11 = scmp.lt.s32.totalorder %s568_s21, %s568_s21 }
  0x20   :  { %p313_p12 = scmp.lt.s32.totalorder %s594_s12, %s307_s11 }
  0x22   :  { %p314_p13 = por %p313_p12, %p312_p11 }
  0x24   :  { %p315_p0 = pnand %p314_p13, %p308_p10 }
  0x26   :  { %318 = shalt.err (!%p315_p0)  }
  0x27   :  { %34 = dma.hbm_to_vmem [thread:$0]  %s23_s3, 16, %s568_s21, [#allocation3] }
  0x28   :  { %s37_s15 = scalar_lea.hbm %s707_s1, %s254_s4  ;;  %s256_s16 = sshll.u32 %s570_s25, 4 }
  0x29   :  { %s319_s17 = scalar_lea.hbm %s37_s15, 16  ;;  %p322_p2 = scmp.lt.u32.totalorder %s37_s15, %s707_s1 }
  0x2a   :  { %p320_p1 = scmp.ne.s32.totalorder %s37_s15, %s319_s17  ;;  %p323_p3 = scmp.lt.u32.totalorder %s585_s8, %s319_s17 }
  0x2b   :  { %p325_p5 = scmp.lt.u32.totalorder %s319_s17, %s37_s15 }
  0x2c   :  { %p324_p4 = por %p323_p3, %p322_p2 }
  0x2e   :  { %p326_p6 = por %p325_p5, %p324_p4 }
  0x30   :  { %p327_p7 = pnand %p326_p6, %p320_p1 }
  0x32   :  { %330 = shalt.err (!%p327_p7)  }
  0x33   :  { %s331_s20 = scalar_lea.vmem %s572_s24, 16  ;;  %p336_p9 = scmp.lt.s32.totalorder %s572_s24, %s568_s21 }
  0x34   :  { %p332_p8 = scmp.ne.s32.totalorder %s572_s24, %s331_s20  ;;  %p337_p10 = scmp.lt.s32.totalorder %s594_s12, %s331_s20 }
  0x36   :  { %p338_p11 = por %p337_p10, %p336_p9 }
  0x38   :  { %p339_p12 = pnand %p338_p11, %p332_p8 }
  0x3a   :  { %342 = shalt.err (!%p339_p12)  }
  0x3b   :  { %50 = dma.hbm_to_vmem [thread:$0]  %s37_s15, 16, %s572_s24, [#allocation3 + $0x1] }
  0x3c   :  { %s53_s25 = scalar_lea.hbm %s707_s1, %s256_s16  ;;  %s258_s26 = sshll.u32 %s574_s0, 4 }
  0x3d   :  { %s343_s28 = scalar_lea.hbm %s53_s25, 16  ;;  %p346_p0 = scmp.lt.u32.totalorder %s53_s25, %s707_s1 }
  0x3e   :  { %p344_p13 = scmp.ne.s32.totalorder %s53_s25, %s343_s28  ;;  %p347_p1 = scmp.lt.u32.totalorder %s585_s8, %s343_s28 }
  0x3f   :  { %p349_p3 = scmp.lt.u32.totalorder %s343_s28, %s53_s25 }
  0x40   :  { %p348_p2 = por %p347_p1, %p346_p0 }
  0x42   :  { %p350_p4 = por %p349_p3, %p348_p2 }
  0x44   :  { %p351_p5 = pnand %p350_p4, %p344_p13 }
  0x46   :  { %354 = shalt.err (!%p351_p5)  }
  0x47   :  { %s355_s24 = scalar_lea.vmem %s576_s27, 16  ;;  %p360_p7 = scmp.lt.s32.totalorder %s576_s27, %s568_s21 }
  0x48   :  { %p356_p6 = scmp.ne.s32.totalorder %s576_s27, %s355_s24  ;;  %p361_p8 = scmp.lt.s32.totalorder %s594_s12, %s355_s24 }
  0x4a   :  { %p362_p9 = por %p361_p8, %p360_p7 }
  0x4c   :  { %p363_p10 = pnand %p362_p9, %p356_p6 }
  0x4e   :  { %366 = shalt.err (!%p363_p10)  }
  0x4f   :  { %66 = dma.hbm_to_vmem [thread:$0]  %s53_s25, 16, %s576_s27, [#allocation3 + $0x2] }
  0x50   :  { %s69_s4 = scalar_lea.hbm %s707_s1, %s258_s26  ;;  %s533_s5 = smov [#allocation2 + $0x3]  }
  0x51   :  { %s79_s6 = sshll.u32 %s533_s5, 4  ;;  %s631_s7 = sld [smem:[#allocation4 + $0x4]]  ;;  %s80_s6 = int_to_ptr.vmem [resolvable:$true] %s79_s6 }
  0x52   :  { %s367_s9 = scalar_lea.hbm %s69_s4, 16  ;;  %p370_p12 = scmp.lt.u32.totalorder %s69_s4, %s707_s1 }
  0x53   :  { %p368_p11 = scmp.ne.s32.totalorder %s69_s4, %s367_s9  ;;  %p371_p13 = scmp.lt.u32.totalorder %s585_s8, %s367_s9 }
  0x54   :  { %p373_p1 = scmp.lt.u32.totalorder %s367_s9, %s69_s4 }
  0x55   :  { %p372_p0 = por %p371_p13, %p370_p12 }
  0x57   :  { %p374_p2 = por %p373_p1, %p372_p0 }
  0x59   :  { %p375_p3 = pnand %p374_p2, %p368_p11 }
  0x5b   :  { %378 = shalt.err (!%p375_p3)  }
  0x5c   :  { %s379_s27 = scalar_lea.vmem %s80_s6, 16  ;;  %p384_p5 = scmp.lt.s32.totalorder %s80_s6, %s568_s21 }
  0x5d   :  { %p380_p4 = scmp.ne.s32.totalorder %s80_s6, %s379_s27  ;;  %p385_p6 = scmp.lt.s32.totalorder %s594_s12, %s379_s27 }
  0x5f   :  { %p386_p7 = por %p385_p6, %p384_p5 }
  0x61   :  { %p387_p8 = pnand %p386_p7, %p380_p4 }
  0x63   :  { %390 = shalt.err (!%p387_p8)  }
  0x64   :  { %82 = dma.hbm_to_vmem [thread:$0]  %s69_s4, 16, %s80_s6, [#allocation3 + $0x3] }
  0x65   :  { %s534_s13 = smov [#allocation2 + $0x4]   ;;  %s639_s15 = sld [smem:[#allocation4 + $0x5]] }
  0x66   :  { %s95_s14 = sshll.u32 %s534_s13, 4  ;;  %s535_s16 = smov [#allocation2 + $0x5]   ;;  %s96_s14 = int_to_ptr.vmem [resolvable:$true] %s95_s14 }
  0x67   :  { %s111_s17 = sshll.u32 %s535_s16, 4  ;;  %s641_s18 = sld [smem:[#allocation4 + $0x6]]  ;;  %s644_s17 = int_to_ptr.vmem [resolvable:$true] %s111_s17 }
  0x68   :  { %s260_s19 = sshll.u32 %s631_s7, 4 }
  0x69   :  { %s85_s23 = scalar_lea.hbm %s707_s1, %s260_s19 }
  0x6a   :  { %s391_s25 = scalar_lea.hbm %s85_s23, 16  ;;  %p394_p10 = scmp.lt.u32.totalorder %s85_s23, %s707_s1 }
  0x6b   :  { %p392_p9 = scmp.ne.s32.totalorder %s85_s23, %s391_s25  ;;  %p395_p11 = scmp.lt.u32.totalorder %s585_s8, %s391_s25 }
  0x6c   :  { %p397_p13 = scmp.lt.u32.totalorder %s391_s25, %s85_s23 }
  0x6d   :  { %p396_p12 = por %p395_p11, %p394_p10 }
  0x6f   :  { %p398_p0 = por %p397_p13, %p396_p12 }
  0x71   :  { %p399_p1 = pnand %p398_p0, %p392_p9 }
  0x73   :  { %402 = shalt.err (!%p399_p1)  }
  0x74   :  { %s403_s29 = scalar_lea.vmem %s96_s14, 16  ;;  %p408_p3 = scmp.lt.s32.totalorder %s96_s14, %s568_s21 }
  0x75   :  { %p404_p2 = scmp.ne.s32.totalorder %s96_s14, %s403_s29  ;;  %p409_p4 = scmp.lt.s32.totalorder %s594_s12, %s403_s29 }
  0x77   :  { %p410_p5 = por %p409_p4, %p408_p3 }
  0x79   :  { %p411_p6 = pnand %p410_p5, %p404_p2 }
  0x7b   :  { %414 = shalt.err (!%p411_p6)  }
  0x7c   :  { %98 = dma.hbm_to_vmem [thread:$0]  %s85_s23, 16, %s96_s14, [#allocation3 + $0x4] }
  0x7d   :  { %s262_s30 = sshll.u32 %s639_s15, 4  ;;  %s536_s24 = smov [#allocation2 + $0x6]  }
  0x7e   :  { %s127_s0 = sshll.u32 %s536_s24, 4  ;;  %s101_s5 = scalar_lea.hbm %s707_s1, %s262_s30  ;;  %s659_s0 = int_to_ptr.vmem [resolvable:$true] %s127_s0 }
  0x7f   :  { %s415_s6 = scalar_lea.hbm %s101_s5, 16  ;;  %p418_p8 = scmp.lt.u32.totalorder %s101_s5, %s707_s1 }
  0x80   :  { %p416_p7 = scmp.ne.s32.totalorder %s101_s5, %s415_s6  ;;  %p419_p9 = scmp.lt.u32.totalorder %s585_s8, %s415_s6 }
  0x81   :  { %p421_p11 = scmp.lt.u32.totalorder %s415_s6, %s101_s5 }
  0x82   :  { %p420_p10 = por %p419_p9, %p418_p8 }
  0x84   :  { %p422_p12 = por %p421_p11, %p420_p10 }
  0x86   :  { %p423_p13 = pnand %p422_p12, %p416_p7 }
  0x88   :  { %426 = shalt.err (!%p423_p13)  }
  0x89   :  { %s427_s10 = scalar_lea.vmem %s644_s17, 16  ;;  %p432_p1 = scmp.lt.s32.totalorder %s644_s17, %s568_s21 }
  0x8a   :  { %p428_p0 = scmp.ne.s32.totalorder %s644_s17, %s427_s10  ;;  %p433_p2 = scmp.lt.s32.totalorder %s594_s12, %s427_s10 }
  0x8c   :  { %p434_p3 = por %p433_p2, %p432_p1 }
  0x8e   :  { %p435_p4 = pnand %p434_p3, %p428_p0 }
  0x90   :  { %438 = shalt.err (!%p435_p4)  }
  0x91   :  { %114 = dma.hbm_to_vmem [thread:$0]  %s101_s5, 16, %s644_s17, [#allocation3 + $0x5] }
  0x92   :  { %s264_s11 = sshll.u32 %s641_s18, 4  ;;  %s265_s27 = sld [smem:[#allocation4 + $0x7]] }
  0x93   :  { %s117_s15 = scalar_lea.hbm %s707_s1, %s264_s11 }
  0x94   :  { %s439_s16 = scalar_lea.hbm %s117_s15, 16  ;;  %p442_p6 = scmp.lt.u32.totalorder %s117_s15, %s707_s1 }
  0x95   :  { %p440_p5 = scmp.ne.s32.totalorder %s117_s15, %s439_s16  ;;  %p443_p7 = scmp.lt.u32.totalorder %s585_s8, %s439_s16 }
  0x96   :  { %p445_p9 = scmp.lt.u32.totalorder %s439_s16, %s117_s15 }
  0x97   :  { %p444_p8 = por %p443_p7, %p442_p6 }
  0x99   :  { %p446_p10 = por %p445_p9, %p444_p8 }
  0x9b   :  { %p447_p11 = pnand %p446_p10, %p440_p5 }
  0x9d   :  { %450 = shalt.err (!%p447_p11)  }
  0x9e   :  { %s451_s17 = scalar_lea.vmem %s659_s0, 16  ;;  %p456_p13 = scmp.lt.s32.totalorder %s659_s0, %s568_s21 }
  0x9f   :  { %p452_p12 = scmp.ne.s32.totalorder %s659_s0, %s451_s17  ;;  %p457_p0 = scmp.lt.s32.totalorder %s594_s12, %s451_s17 }
  0xa1   :  { %p458_p1 = por %p457_p0, %p456_p13 }
  0xa3   :  { %p459_p2 = pnand %p458_p1, %p452_p12 }
  0xa5   :  { %462 = shalt.err (!%p459_p2)  }
  0xa6   :  { %130 = dma.hbm_to_vmem [thread:$0]  %s117_s15, 16, %s659_s0, [#allocation3 + $0x6] }
  0xa7   :  { %s537_s18 = smov [#allocation2 + $0x7]   ;;  %s266_s23 = sshll.u32 %s265_s27, 4 }
  0xa8   :  { %s143_s22 = sshll.u32 %s537_s18, 4  ;;  %s133_s28 = scalar_lea.hbm %s707_s1, %s266_s23  ;;  %s144_s22 = int_to_ptr.vmem [resolvable:$true] %s143_s22 }
  0xa9   :  { %s463_s29 = scalar_lea.hbm %s133_s28, 16  ;;  %p466_p4 = scmp.lt.u32.totalorder %s133_s28, %s707_s1 }
  0xaa   :  { %p464_p3 = scmp.ne.s32.totalorder %s133_s28, %s463_s29  ;;  %p467_p5 = scmp.lt.u32.totalorder %s585_s8, %s463_s29 }
  0xab   :  { %p469_p7 = scmp.lt.u32.totalorder %s463_s29, %s133_s28 }
  0xac   :  { %p468_p6 = por %p467_p5, %p466_p4 }
  0xae   :  { %p470_p8 = por %p469_p7, %p468_p6 }
  0xb0   :  { %p471_p9 = pnand %p470_p8, %p464_p3 }
  0xb2   :  { %474 = shalt.err (!%p471_p9)  }
  0xb3   :  { %s475_s0 = scalar_lea.vmem %s144_s22, 16  ;;  %p480_p11 = scmp.lt.s32.totalorder %s144_s22, %s568_s21 }
  0xb4   :  { %p476_p10 = scmp.ne.s32.totalorder %s144_s22, %s475_s0  ;;  %p481_p12 = scmp.lt.s32.totalorder %s594_s12, %s475_s0 }
  0xb6   :  { %p482_p13 = por %p481_p12, %p480_p11 }
  0xb8   :  { %p483_p0 = pnand %p482_p13, %p476_p10 }
  0xba   :  { %486 = shalt.err (!%p483_p0)  }
  0xbb   :  { %146 = dma.hbm_to_vmem [thread:$0]  %s133_s28, 16, %s144_s22, [#allocation3 + $0x7] }
  0xbc   :  { %511 = dma.done.wait [#allocation3], 16 }
  0xbd   :  { %512 = vsyncadd [#allocation3], 4294967280 }
  0xbe   :  { %513 = dma.done.wait [#allocation3 + $0x1], 16 }
  0xbf   :  { %514 = vsyncadd [#allocation3 + $0x1], 4294967280 }
  0xc0   :  { %515 = dma.done.wait [#allocation3 + $0x2], 16 }
  0xc1   :  { %516 = vsyncadd [#allocation3 + $0x2], 4294967280 }
  0xc2   :  { %517 = dma.done.wait [#allocation3 + $0x3], 16 }
  0xc3   :  { %518 = vsyncadd [#allocation3 + $0x3], 4294967280 }
  0xc4   :  { %519 = dma.done.wait [#allocation3 + $0x4], 16 }
  0xc5   :  { %520 = vsyncadd [#allocation3 + $0x4], 4294967280 }
  0xc6   :  { %521 = dma.done.wait [#allocation3 + $0x5], 16 }
  0xc7   :  { %522 = vsyncadd [#allocation3 + $0x5], 4294967280 }
  0xc8   :  { %523 = dma.done.wait [#allocation3 + $0x6], 16 }
  0xc9   :  { %524 = vsyncadd [#allocation3 + $0x6], 4294967280 }
  0xca   :  { %525 = dma.done.wait [#allocation3 + $0x7], 16 }
  0xcb   :  { %526 = vsyncadd [#allocation3 + $0x7], 4294967280  ;;  %s538_s1 = smov [#allocation7]   ;;  %v164_v0 = vld [vmem:[#allocation2] sm:$0xff] }
  0xcc   :  { %s172_s21 = sshll.u32 %s538_s1, 4  ;;  %165 = vst [vmem:[#allocation7] sm:$0xff] %v164_v0  ;;  %s173_s21 = int_to_ptr.vmem [resolvable:$true] %s172_s21 }
  0xcd   :  { %s487_s8 = scalar_lea.vmem %s173_s21, 128  ;;  %p492_p2 = scmp.lt.s32.totalorder %s173_s21, %s173_s21 }
  0xce   :  { %p488_p1 = scmp.ne.s32.totalorder %s173_s21, %s487_s8  ;;  %p493_p3 = scmp.lt.s32.totalorder %s487_s8, %s487_s8 }
  0xd0   :  { %p494_p4 = por %p493_p3, %p492_p2 }
  0xd2   :  { %p495_p5 = pnand %p494_p4, %p488_p1 }
  0xd4   :  { %498 = shalt.err (!%p495_p5)
}
  0xd5   :  { %s499_s4 = scalar_lea.hbm %s708_s2, 128 }
  0xd6   :  { %p500_p6 = scmp.ne.s32.totalorder %s708_s2, %s499_s4  ;;  %p503_p7 = scmp.lt.u32.totalorder %s499_s4, %s708_s2 }
  0xd8   :  { %p505_p8 = pnand %p503_p7, %p500_p6 }
  0xda   :  { %508 = shalt.err (!%p505_p8)
}
  0xdb   :  { %175 = dma.vmem_to_hbm [thread:$0]  %s173_s21, 128, %s708_s2, [#allocation5]  }
  0xdc   :  { %527 = dma.done.wait [#allocation5], 128  }
  0xdd   :  { %528 = vsyncadd [#allocation5], 4294967168 }
  0xde   :  { %179 = vsyncpa [#allocation5], 1 }
  0xdf   :  { %180 = vsyncpa [#allocation6], 1 }
  0xe0   :  { %181 = vsyncmov [#allocation3] }
  0xe3   :  { %s182_s27 = vpop.sfrf %181 }
  0xe4   :  { %p267_p9 = scmp.ne.s32.totalorder %s182_s27, 0 }
  0xe6   :  { %186 = shalt.err (%p267_p9)  }
  0xe7   :  { %188 = vsyncmov [#allocation3 + $0x1] }
  0xea   :  { %s189_s13 = vpop.sfrf %188 }
  0xeb   :  { %p268_p10 = scmp.ne.s32.totalorder %s189_s13, 0 }
  0xed   :  { %193 = shalt.err (%p268_p10)  }
  0xee   :  { %195 = vsyncmov [#allocation3 + $0x2] }
  0xf1   :  { %s196_s14 = vpop.sfrf %195 }
  0xf2   :  { %p269_p11 = scmp.ne.s32.totalorder %s196_s14, 0 }
  0xf4   :  { %200 = shalt.err (%p269_p11)  }
  0xf5   :  { %202 = vsyncmov [#allocation3 + $0x3] }
  0xf8   :  { %s203_s15 = vpop.sfrf %202 }
  0xf9   :  { %p270_p12 = scmp.ne.s32.totalorder %s203_s15, 0 }
  0xfb   :  { %207 = shalt.err (%p270_p12)  }
  0xfc   :  { %209 = vsyncmov [#allocation3 + $0x4] }
  0xff   :  { %s210_s2 = vpop.sfrf %209 }
 0x100   :  { %p271_p13 = scmp.ne.s32.totalorder %s210_s2, 0 }
 0x102   :  { %214 = shalt.err (%p271_p13)  }
 0x103   :  { %216 = vsyncmov [#allocation3 + $0x5] }
 0x106   :  { %s217_s16 = vpop.sfrf %216 }
 0x107   :  { %p272_p0 = scmp.ne.s32.totalorder %s217_s16, 0 }
 0x109   :  { %221 = shalt.err (%p272_p0)  }
 0x10a   :  { %223 = vsyncmov [#allocation3 + $0x6] }
 0x10d   :  { %s224_s19 = vpop.sfrf %223 }
 0x10e   :  { %p273_p1 = scmp.ne.s32.totalorder %s224_s19, 0 }
 0x110   :  { %228 = shalt.err (%p273_p1)  }
 0x111   :  { %230 = vsyncmov [#allocation3 + $0x7] }
 0x114   :  { %s231_s20 = vpop.sfrf %230 }
 0x115   :  { %p274_p2 = scmp.ne.s32.totalorder %s231_s20, 0 }
 0x117   :  { %235 = shalt.err (%p274_p2)  }

</bundles_post_ra>
